<compile_context>
chip_gen: v6e
topology: v6e:2x2x1
jax: 0.10.0
libtpu: 0.0.40
codegen_flags: <defaults>
</compile_context>

<pallas_src>
import jax
import jax.numpy as jnp
from jax.experimental import pallas as pl
from jax.experimental.pallas import tpu as pltpu

WINDOW_SIZE = 512
# ReLU after layers 1,2,4,5; none after the bottleneck (3) or the final (6) layer.
RELU_FLAGS_6 = (True, True, False, True, True, False)
RELU_FLAGS_FUSED = (True, True, True, True, False)


def _make_kernel(n_layers, relu_flags):
    def kernel(x_ref, *refs):
        out_ref = refs[-1]
        wb = refs[:-1]
        # Activations flow between layers in bf16; each matmul accumulates in
        # f32 on the MXU; bias-add + ReLU stay f32 on the VPU (v5e-safe).
        h = x_ref[...].astype(jnp.bfloat16)
        for i in range(n_layers):
            w_ref, b_ref = wb[2 * i], wb[2 * i + 1]
            acc = jnp.dot(h, w_ref[...], preferred_element_type=jnp.float32)
            acc = acc + b_ref[...]
            if relu_flags[i]:
                acc = jnp.maximum(acc, 0.0)
            # Cast inter-layer activations to bf16 immediately: halves live
            # VMEM/vreg footprint and vector-store pressure at large tiles.
            h = acc.astype(jnp.bfloat16) if i < n_layers - 1 else acc
        out_ref[...] = h.astype(out_ref.dtype)

    return kernel


def _choose_block_b(B, target=1024):
    # Batch tile: multiple of 8 (sublane). Big enough to amortize the
    # ~0.35us/step pipeline overhead, but keep >= 2 grid steps so v7x's two
    # TensorCores can both be used via dimension_semantics=("parallel",).
    if B < 16:
        return 8
    half = -(-B // 2)                # ceil(B / 2)
    half = ((half + 7) // 8) * 8     # round up to a sublane multiple
    return min(target, half)


def autoencoder_forward(x, params, *, relu_flags=None, block_b=None,
                        out_dtype=jnp.bfloat16):
    """x: (B, 512), preferably bf16 (avoids an extra f32 HBM pass).
    params: list of (W(in,out), b(1,out)) f32 tuples. Returns (B, 512) out_dtype."""
    B, F = x.shape
    assert F == WINDOW_SIZE
    if relu_flags is None:
        relu_flags = RELU_FLAGS_6
    n_layers = len(params)
    assert len(relu_flags) == n_layers

    if block_b is None:
        block_b = _choose_block_b(B)
    # No wrapper-side jnp.pad: Pallas masks the ragged final block (rows are
    # independent, so the unspecified pad rows never affect valid outputs).
    grid = (pl.cdiv(B, block_b),)

    # Weights in VMEM as bf16 (half the HBM/VMEM traffic, full-rate MXU on
    # v6e/v7x); biases stay f32 for the f32 bias-add / ReLU path.
    flat = []
    for w, b in params:
        flat.append(w.astype(jnp.bfloat16))
        flat.append(b.astype(jnp.float32))

    # x / out tile over the batch grid axis; weights & biases use a constant
    # block index -> DMA'd once and VMEM-resident across all grid steps.
    in_specs = [pl.BlockSpec((block_b, WINDOW_SIZE), lambda i: (i, 0))]
    for a in flat:
        in_specs.append(pl.BlockSpec(a.shape, lambda i: (0, 0)))
    out_spec = pl.BlockSpec((block_b, WINDOW_SIZE), lambda i: (i, 0))

    # VMEM budget: 2x weights (default double-buffering; only ~1.2 MB total so
    # single-buffering them is left as a micro-opt), double-buffered in/out
    # activation tiles, and the compiler-held per-layer intermediates
    # (f32 accumulator + bf16 copy ~ 6 B/elem), plus fixed slack. Scales with
    # block_b and stays well inside v7x's 64 MiB physical VMEM.
    weight_bytes = sum(int(a.size) * a.dtype.itemsize for a in flat)
    in_tile = block_b * WINDOW_SIZE * x.dtype.itemsize
    out_tile = block_b * WINDOW_SIZE * jnp.dtype(out_dtype).itemsize
    inter_bytes = block_b * sum(int(w.shape[1]) for w, _ in params) * 6
    vmem_limit = int(2 * weight_bytes + 2 * (in_tile + out_tile)
                     + inter_bytes + (2 << 20))

    kernel = _make_kernel(n_layers, relu_flags)
    return pl.pallas_call(
        kernel,
        out_shape=jax.ShapeDtypeStruct((B, WINDOW_SIZE), out_dtype),
        grid=grid,
        in_specs=in_specs,
        out_specs=out_spec,
        compiler_params=pltpu.CompilerParams(
            dimension_semantics=("parallel",),
            vmem_limit_bytes=vmem_limit,
        ),
    )(x, *flat)


def fuse_bottleneck(params):
    """Fold the nonlinearity-free 64->16->64 pair into one 64x64 layer (f32 math).
    Removes the two worst-MXU-utilization matmuls; rounding differs slightly."""
    (w1, b1), (w2, b2), (w3, b3), (w4, b4), (w5, b5), (w6, b6) = params
    w34 = w3 @ w4
    b34 = b3 @ w4 + b4
    return [(w1, b1), (w2, b2), (w34, b34), (w5, b5), (w6, b6)], RELU_FLAGS_FUSED


def init_params(key):
    """Deterministic init mimicking nn.Linear (weights stored transposed: (in, out))."""
    dims = [(WINDOW_SIZE, 256), (256, 64), (64, 16),
            (16, 64), (64, 256), (256, WINDOW_SIZE)]
    params = []
    for (din, dout) in dims:
        key, kw, kb = jax.random.split(key, 3)
        bound = 1.0 / jnp.sqrt(din)
        w = jax.random.uniform(kw, (din, dout), jnp.float32, -bound, bound)
        b = jax.random.uniform(kb, (1, dout), jnp.float32, -bound, bound)
        params.append((w, b))
    return params


def reference_forward(x, params, relu_flags):
    """Pure-JAX reference mirroring the kernel numerics (bf16 matmul inputs,
    f32 accumulation, bf16 inter-layer activations). Returns f32."""
    h = x.astype(jnp.bfloat16)
    n = len(params)
    for i, ((w, b), relu) in enumerate(zip(params, relu_flags)):
        acc = jnp.dot(h, w.astype(jnp.bfloat16),
                      preferred_element_type=jnp.float32) + b.astype(jnp.float32)
        if relu:
            acc = jnp.maximum(acc, 0.0)
        h = acc.astype(jnp.bfloat16) if i < n - 1 else acc
    return h


if __name__ == "__main__":
    key = jax.random.PRNGKey(0)
    kx1, kx2, kp = jax.random.split(key, 3)
    params = init_params(kp)

    # Case 1: bf16 I/O, B=32 -> block_b=16, grid=(2,) (both v7x TCs busy), even tiles.
    B1 = 32
    x1 = jax.random.normal(kx1, (B1, WINDOW_SIZE), jnp.float32).astype(jnp.bfloat16)
    out1 = jax.block_until_ready(autoencoder_forward(x1, params))
    ref1 = reference_forward(x1, params, RELU_FLAGS_6)
    assert out1.shape == (B1, WINDOW_SIZE) and out1.dtype == jnp.bfloat16
    assert jnp.allclose(out1.astype(jnp.float32), ref1, atol=2e-2, rtol=2e-2), \
        "mismatch vs reference (B=32)"

    # Case 2: ragged batch (B=24, block_b=16 -> grid=(2,), masked final tile,
    # no wrapper pad) with the fused 64x64 bottleneck (v5e MXU-utilization win).
    B2 = 24
    x2 = jax.random.normal(kx2, (B2, WINDOW_SIZE), jnp.float32).astype(jnp.bfloat16)
    fparams, fflags = fuse_bottleneck(params)
    out2 = jax.block_until_ready(
        autoencoder_forward(x2, fparams, relu_flags=fflags, block_b=16))
    ref2 = reference_forward(x2, fparams, fflags)
    assert out2.shape == (B2, WINDOW_SIZE) and out2.dtype == jnp.bfloat16
    assert jnp.allclose(out2.astype(jnp.float32), ref2, atol=2e-2, rtol=2e-2), \
        "mismatch vs reference (B=24, fused bottleneck)"

    print("KERNEL_OK")
</pallas_src>

<mosaic_0001>
module attributes {stable_mosaic.version = 11 : i64} {
  func.func @kernel(%arg0: i32, %arg1: memref<16x512xbf16, #tpu.memory_space<vmem>>, %arg2: memref<512x256xbf16, #tpu.memory_space<vmem>>, %arg3: memref<1x256xf32, #tpu.memory_space<vmem>>, %arg4: memref<256x64xbf16, #tpu.memory_space<vmem>>, %arg5: memref<1x64xf32, #tpu.memory_space<vmem>>, %arg6: memref<64x16xbf16, #tpu.memory_space<vmem>>, %arg7: memref<1x16xf32, #tpu.memory_space<vmem>>, %arg8: memref<16x64xbf16, #tpu.memory_space<vmem>>, %arg9: memref<1x64xf32, #tpu.memory_space<vmem>>, %arg10: memref<64x256xbf16, #tpu.memory_space<vmem>>, %arg11: memref<1x256xf32, #tpu.memory_space<vmem>>, %arg12: memref<256x512xbf16, #tpu.memory_space<vmem>>, %arg13: memref<1x512xf32, #tpu.memory_space<vmem>>, %arg14: memref<16x512xbf16, #tpu.memory_space<vmem>>) attributes {dimension_semantics = [#tpu.dimension_semantics<parallel>], iteration_bounds = array<i64: 2>, scalar_prefetch = 0 : i64, scratch_operands = 0 : i64, tpu.core_type = #tpu.core_type<tc>, window_params = [{transform_indices = @transform_0, window_bounds = array<i64: 16, 512>}, {pipeline_mode = #tpu.pipeline_mode<synchronous>, transform_indices = @transform_1, window_bounds = array<i64: 512, 256>}, {pipeline_mode = #tpu.pipeline_mode<synchronous>, transform_indices = @transform_2, window_bounds = array<i64: 1, 256>}, {pipeline_mode = #tpu.pipeline_mode<synchronous>, transform_indices = @transform_3, window_bounds = array<i64: 256, 64>}, {pipeline_mode = #tpu.pipeline_mode<synchronous>, transform_indices = @transform_4, window_bounds = array<i64: 1, 64>}, {pipeline_mode = #tpu.pipeline_mode<synchronous>, transform_indices = @transform_5, window_bounds = array<i64: 64, 16>}, {pipeline_mode = #tpu.pipeline_mode<synchronous>, transform_indices = @transform_6, window_bounds = array<i64: 1, 16>}, {pipeline_mode = #tpu.pipeline_mode<synchronous>, transform_indices = @transform_7, window_bounds = array<i64: 16, 64>}, {pipeline_mode = #tpu.pipeline_mode<synchronous>, transform_indices = @transform_8, window_bounds = array<i64: 1, 64>}, {pipeline_mode = #tpu.pipeline_mode<synchronous>, transform_indices = @transform_9, window_bounds = array<i64: 64, 256>}, {pipeline_mode = #tpu.pipeline_mode<synchronous>, transform_indices = @transform_10, window_bounds = array<i64: 1, 256>}, {pipeline_mode = #tpu.pipeline_mode<synchronous>, transform_indices = @transform_11, window_bounds = array<i64: 256, 512>}, {pipeline_mode = #tpu.pipeline_mode<synchronous>, transform_indices = @transform_12, window_bounds = array<i64: 1, 512>}, {transform_indices = @transform_13, window_bounds = array<i64: 16, 512>}]} {
    %c0 = arith.constant 0 : index
    %c0_0 = arith.constant 0 : index
    %0 = vector.load %arg1[%c0, %c0_0] : memref<16x512xbf16, #tpu.memory_space<vmem>>, vector<16x512xbf16>
    %c0_1 = arith.constant 0 : index
    %c0_2 = arith.constant 0 : index
    %1 = vector.load %arg2[%c0_1, %c0_2] : memref<512x256xbf16, #tpu.memory_space<vmem>>, vector<512x256xbf16>
    %cst = arith.constant dense<0.000000e+00> : vector<16x256xf32>
    %2 = tpu.matmul %0, %1, %cst {dimension_numbers = #tpu.dot_dimension_numbers<[1], [0], [0], [1], [0, 0, 1, 1], [], []>} : vector<16x512xbf16>, vector<512x256xbf16>, vector<16x256xf32> -> vector<16x256xf32>
    %c0_3 = arith.constant 0 : index
    %c0_4 = arith.constant 0 : index
    %3 = vector.load %arg3[%c0_3, %c0_4] : memref<1x256xf32, #tpu.memory_space<vmem>>, vector<1x256xf32>
    %4 = vector.broadcast %3 : vector<1x256xf32> to vector<16x256xf32>
    %5 = arith.addf %2, %4 : vector<16x256xf32>
    %cst_5 = arith.constant 0.000000e+00 : f32
    %6 = vector.broadcast %cst_5 : f32 to vector<16x256xf32>
    %7 = arith.maximumf %5, %6 : vector<16x256xf32>
    %8 = arith.truncf %7 : vector<16x256xf32> to vector<16x256xbf16>
    %c0_6 = arith.constant 0 : index
    %c0_7 = arith.constant 0 : index
    %9 = vector.load %arg4[%c0_6, %c0_7] : memref<256x64xbf16, #tpu.memory_space<vmem>>, vector<256x64xbf16>
    %cst_8 = arith.constant dense<0.000000e+00> : vector<16x64xf32>
    %10 = tpu.matmul %8, %9, %cst_8 {dimension_numbers = #tpu.dot_dimension_numbers<[1], [0], [0], [1], [0, 0, 1, 1], [], []>} : vector<16x256xbf16>, vector<256x64xbf16>, vector<16x64xf32> -> vector<16x64xf32>
    %c0_9 = arith.constant 0 : index
    %c0_10 = arith.constant 0 : index
    %11 = vector.load %arg5[%c0_9, %c0_10] : memref<1x64xf32, #tpu.memory_space<vmem>>, vector<1x64xf32>
    %12 = vector.broadcast %11 : vector<1x64xf32> to vector<16x64xf32>
    %13 = arith.addf %10, %12 : vector<16x64xf32>
    %cst_11 = arith.constant 0.000000e+00 : f32
    %14 = vector.broadcast %cst_11 : f32 to vector<16x64xf32>
    %15 = arith.maximumf %13, %14 : vector<16x64xf32>
    %16 = arith.truncf %15 : vector<16x64xf32> to vector<16x64xbf16>
    %c0_12 = arith.constant 0 : index
    %c0_13 = arith.constant 0 : index
    %17 = vector.load %arg6[%c0_12, %c0_13] : memref<64x16xbf16, #tpu.memory_space<vmem>>, vector<64x16xbf16>
    %cst_14 = arith.constant dense<0.000000e+00> : vector<16x16xf32>
    %18 = tpu.matmul %16, %17, %cst_14 {dimension_numbers = #tpu.dot_dimension_numbers<[1], [0], [0], [1], [0, 0, 1, 1], [], []>} : vector<16x64xbf16>, vector<64x16xbf16>, vector<16x16xf32> -> vector<16x16xf32>
    %c0_15 = arith.constant 0 : index
    %c0_16 = arith.constant 0 : index
    %19 = vector.load %arg7[%c0_15, %c0_16] : memref<1x16xf32, #tpu.memory_space<vmem>>, vector<1x16xf32>
    %20 = vector.broadcast %19 : vector<1x16xf32> to vector<16x16xf32>
    %21 = arith.addf %18, %20 : vector<16x16xf32>
    %22 = arith.truncf %21 : vector<16x16xf32> to vector<16x16xbf16>
    %c0_17 = arith.constant 0 : index
    %c0_18 = arith.constant 0 : index
    %23 = vector.load %arg8[%c0_17, %c0_18] : memref<16x64xbf16, #tpu.memory_space<vmem>>, vector<16x64xbf16>
    %cst_19 = arith.constant dense<0.000000e+00> : vector<16x64xf32>
    %24 = tpu.matmul %22, %23, %cst_19 {dimension_numbers = #tpu.dot_dimension_numbers<[1], [0], [0], [1], [0, 0, 1, 1], [], []>} : vector<16x16xbf16>, vector<16x64xbf16>, vector<16x64xf32> -> vector<16x64xf32>
    %c0_20 = arith.constant 0 : index
    %c0_21 = arith.constant 0 : index
    %25 = vector.load %arg9[%c0_20, %c0_21] : memref<1x64xf32, #tpu.memory_space<vmem>>, vector<1x64xf32>
    %26 = vector.broadcast %25 : vector<1x64xf32> to vector<16x64xf32>
    %27 = arith.addf %24, %26 : vector<16x64xf32>
    %cst_22 = arith.constant 0.000000e+00 : f32
    %28 = vector.broadcast %cst_22 : f32 to vector<16x64xf32>
    %29 = arith.maximumf %27, %28 : vector<16x64xf32>
    %30 = arith.truncf %29 : vector<16x64xf32> to vector<16x64xbf16>
    %c0_23 = arith.constant 0 : index
    %c0_24 = arith.constant 0 : index
    %31 = vector.load %arg10[%c0_23, %c0_24] : memref<64x256xbf16, #tpu.memory_space<vmem>>, vector<64x256xbf16>
    %cst_25 = arith.constant dense<0.000000e+00> : vector<16x256xf32>
    %32 = tpu.matmul %30, %31, %cst_25 {dimension_numbers = #tpu.dot_dimension_numbers<[1], [0], [0], [1], [0, 0, 1, 1], [], []>} : vector<16x64xbf16>, vector<64x256xbf16>, vector<16x256xf32> -> vector<16x256xf32>
    %c0_26 = arith.constant 0 : index
    %c0_27 = arith.constant 0 : index
    %33 = vector.load %arg11[%c0_26, %c0_27] : memref<1x256xf32, #tpu.memory_space<vmem>>, vector<1x256xf32>
    %34 = vector.broadcast %33 : vector<1x256xf32> to vector<16x256xf32>
    %35 = arith.addf %32, %34 : vector<16x256xf32>
    %cst_28 = arith.constant 0.000000e+00 : f32
    %36 = vector.broadcast %cst_28 : f32 to vector<16x256xf32>
    %37 = arith.maximumf %35, %36 : vector<16x256xf32>
    %38 = arith.truncf %37 : vector<16x256xf32> to vector<16x256xbf16>
    %c0_29 = arith.constant 0 : index
    %c0_30 = arith.constant 0 : index
    %39 = vector.load %arg12[%c0_29, %c0_30] : memref<256x512xbf16, #tpu.memory_space<vmem>>, vector<256x512xbf16>
    %cst_31 = arith.constant dense<0.000000e+00> : vector<16x512xf32>
    %40 = tpu.matmul %38, %39, %cst_31 {dimension_numbers = #tpu.dot_dimension_numbers<[1], [0], [0], [1], [0, 0, 1, 1], [], []>} : vector<16x256xbf16>, vector<256x512xbf16>, vector<16x512xf32> -> vector<16x512xf32>
    %c0_32 = arith.constant 0 : index
    %c0_33 = arith.constant 0 : index
    %41 = vector.load %arg13[%c0_32, %c0_33] : memref<1x512xf32, #tpu.memory_space<vmem>>, vector<1x512xf32>
    %42 = vector.broadcast %41 : vector<1x512xf32> to vector<16x512xf32>
    %43 = arith.addf %40, %42 : vector<16x512xf32>
    %44 = arith.truncf %43 : vector<16x512xf32> to vector<16x512xbf16>
    %c0_34 = arith.constant 0 : index
    %c0_35 = arith.constant 0 : index
    %45 = vector.load %arg14[%c0_34, %c0_35] : memref<16x512xbf16, #tpu.memory_space<vmem>>, vector<16x512xbf16>
    tpu.vector_store %arg14[%c0_34, %c0_35], %44 {strides = array<i32>} : memref<16x512xbf16, #tpu.memory_space<vmem>>, vector<16x512xbf16>,
    return
  }
  func.func @transform_0(%arg0: i32) -> (i32, i32) {
    %c0_i32 = arith.constant 0 : i32
    %c0_i32_0 = arith.constant 0 : i32
    return %arg0, %c0_i32 : i32, i32
  }
  func.func @transform_1(%arg0: i32) -> (i32, i32) {
    %c0_i32 = arith.constant 0 : i32
    %c0_i32_0 = arith.constant 0 : i32
    %c0_i32_1 = arith.constant 0 : i32
    return %c0_i32, %c0_i32_0 : i32, i32
  }
  func.func @transform_2(%arg0: i32) -> (i32, i32) {
    %c0_i32 = arith.constant 0 : i32
    %c0_i32_0 = arith.constant 0 : i32
    %c0_i32_1 = arith.constant 0 : i32
    return %c0_i32, %c0_i32_0 : i32, i32
  }
  func.func @transform_3(%arg0: i32) -> (i32, i32) {
    %c0_i32 = arith.constant 0 : i32
    %c0_i32_0 = arith.constant 0 : i32
    %c0_i32_1 = arith.constant 0 : i32
    return %c0_i32, %c0_i32_0 : i32, i32
  }
  func.func @transform_4(%arg0: i32) -> (i32, i32) {
    %c0_i32 = arith.constant 0 : i32
    %c0_i32_0 = arith.constant 0 : i32
    %c0_i32_1 = arith.constant 0 : i32
    return %c0_i32, %c0_i32_0 : i32, i32
  }
  func.func @transform_5(%arg0: i32) -> (i32, i32) {
    %c0_i32 = arith.constant 0 : i32
    %c0_i32_0 = arith.constant 0 : i32
    %c0_i32_1 = arith.constant 0 : i32
    return %c0_i32, %c0_i32_0 : i32, i32
  }
  func.func @transform_6(%arg0: i32) -> (i32, i32) {
    %c0_i32 = arith.constant 0 : i32
    %c0_i32_0 = arith.constant 0 : i32
    %c0_i32_1 = arith.constant 0 : i32
    return %c0_i32, %c0_i32_0 : i32, i32
  }
  func.func @transform_7(%arg0: i32) -> (i32, i32) {
    %c0_i32 = arith.constant 0 : i32
    %c0_i32_0 = arith.constant 0 : i32
    %c0_i32_1 = arith.constant 0 : i32
    return %c0_i32, %c0_i32_0 : i32, i32
  }
  func.func @transform_8(%arg0: i32) -> (i32, i32) {
    %c0_i32 = arith.constant 0 : i32
    %c0_i32_0 = arith.constant 0 : i32
    %c0_i32_1 = arith.constant 0 : i32
    return %c0_i32, %c0_i32_0 : i32, i32
  }
  func.func @transform_9(%arg0: i32) -> (i32, i32) {
    %c0_i32 = arith.constant 0 : i32
    %c0_i32_0 = arith.constant 0 : i32
    %c0_i32_1 = arith.constant 0 : i32
    return %c0_i32, %c0_i32_0 : i32, i32
  }
  func.func @transform_10(%arg0: i32) -> (i32, i32) {
    %c0_i32 = arith.constant 0 : i32
    %c0_i32_0 = arith.constant 0 : i32
    %c0_i32_1 = arith.constant 0 : i32
    return %c0_i32, %c0_i32_0 : i32, i32
  }
  func.func @transform_11(%arg0: i32) -> (i32, i32) {
    %c0_i32 = arith.constant 0 : i32
    %c0_i32_0 = arith.constant 0 : i32
    %c0_i32_1 = arith.constant 0 : i32
    return %c0_i32, %c0_i32_0 : i32, i32
  }
  func.func @transform_12(%arg0: i32) -> (i32, i32) {
    %c0_i32 = arith.constant 0 : i32
    %c0_i32_0 = arith.constant 0 : i32
    %c0_i32_1 = arith.constant 0 : i32
    return %c0_i32, %c0_i32_0 : i32, i32
  }
  func.func @transform_13(%arg0: i32) -> (i32, i32) {
    %c0_i32 = arith.constant 0 : i32
    %c0_i32_0 = arith.constant 0 : i32
    return %arg0, %c0_i32 : i32, i32
  }
}

</mosaic_0001>

<bundles_post_ra>
// kernel: tpu_custom_call.1
= control target key start
LH: loop header
LB: loop body
LE: loop exit
PB: predicated region body
PF: predicated region fallthrough
CT: control target
= control target key end

     0   :  { %18 = vsyncpa [#allocation3], 0  ;;  %s3070_s0 = inlined_call_operand.vmem [shape: bf16[32,512], index: 0, kind: input, shape index: {}]   ;;  %s3071_s1 = inlined_call_operand.hbm [shape: bf16[512,256], index: 1, kind: input, shape index: {}]   ;;  %s3072_s2 = inlined_call_operand.vmem [shape: f32[1,256], index: 2, kind: input, shape index: {}]   ;;  %s3073_s3 = inlined_call_operand.vmem [shape: bf16[256,64], index: 3, kind: input, shape index: {}]   ;;  %s3074_s4 = inlined_call_operand.vmem [shape: f32[1,64], index: 4, kind: input, shape index: {}]   ;;  %s3075_s5 = inlined_call_operand.vmem [shape: bf16[64,16], index: 5, kind: input, shape index: {}]   ;;  %s3076_s6 = inlined_call_operand.vmem [shape: f32[1,16], index: 6, kind: input, shape index: {}]   ;;  %s3077_s7 = inlined_call_operand.vmem [shape: bf16[16,64], index: 7, kind: input, shape index: {}]   ;;  %s3078_s8 = inlined_call_operand.vmem [shape: f32[1,64], index: 8, kind: input, shape index: {}]   ;;  %s3079_s9 = inlined_call_operand.vmem [shape: bf16[64,256], index: 9, kind: input, shape index: {}]   ;;  %s3080_s10 = inlined_call_operand.vmem [shape: f32[1,256], index: 10, kind: input, shape index: {}]   ;;  %s3081_s11 = inlined_call_operand.hbm [shape: bf16[256,512], index: 11, kind: input, shape index: {}]   ;;  %s3082_s12 = inlined_call_operand.vmem [shape: f32[1,512], index: 12, kind: input, shape index: {}]   ;;  %s3083_s13 = inlined_call_operand.hbm [shape: bf16[32,512], index: 13, kind: output, shape index: {}]  }
   0x1   :  { %19 = vsyncpa [#allocation6], 0 }
   0x2   :  { %20 = vsyncpa [#allocation4], 0 }
   0x3   :  { %22 = vsyncpa [#allocation4 + $0x1], 0  ;;  %s2793_s25 = smov 0   ;;  %s2795_s26 = smov 0  }
   0x4   :  { %s2797_s27 = smov 0   ;;  %s2799_s28 = smov 0  }
   0x5 LB: > { %3090 = sst [smem:[#allocation11_spill]] %s2697_s25  ;;  %s2814_s29 = sadd.s32 4294967295, %s2709_s28   ;;  %s2709_s28 = sphi %s2799_s28, %s3106_s28   ;;  %s2705_s27 = sphi %s2797_s27, %s3108_s27   ;;  %s2701_s26 = sphi %s2795_s26, %s3110_s26   ;;  %s2697_s25 = sphi %s2793_s25, %s3109_s25  }
   0x6   : > { %3091 = sst [smem:[#allocation12_spill]] %s2705_s27  ;;  %s2046_s30 = sadd.s32 4294967294, %s2709_s28  }
   0x7   : > { %s2818_s14 = sadd.s32 1, %s2709_s28   ;;  %s313_s15 = sadd.s32 1, %s2705_s27 }
   0x8   : > { %3092 = sst [smem:[#allocation13_spill]] %s2818_s14  ;;  %s310_s16 = ssub.s32 %s2709_s28, %s2818_s14 }
   0x9   : > { %p323_p0 = scmp.ne.s32.totalorder %s2705_s27, %s2701_s26  ;;  %p311_p1 = scmp.eq.s32.totalorder %s310_s16, 0 }
   0xa   : > { %p324_p2 = scmp.eq.s32.totalorder %s2814_s29, 1  ;;  %p329_p3 = scmp.ne.s32.totalorder %s2701_s26, %s2697_s25 }
   0xb   : > { %p330_p4 = scmp.eq.s32.totalorder %s2046_s30, 1  ;;  %p2047_p7 = scmp.ge.s32.totalorder %s2709_s28, 1 }
   0xc   : > { %s2829_s17 = scalar_select %p311_p1, %s2705_s27, %s313_s15  }
   0xd   : > { %p2831_p5 = por %p324_p2, %p323_p0  ;;  %p2835_p6 = por %p330_p4, %p329_p3 }
   0xe   : > { %3093 = sst [smem:[#allocation14_spill]] %s2829_s17  ;;  %p337_p8 = scmp.lt.s32.totalorder %s2709_s28, 3 }
   0xf   : > { %s3095_s19 = scalar_select %p2835_p6, 1, 0 }
  0x10   : > { %p3085_p9 = scmp.eq.s32.totalorder %s2814_s29, 0  ;;  %p2842_p10 = pnand %p2047_p7, %p337_p8 }
  0x11   : > { %3096 = sst [smem:[#allocation15_spill]] %s3095_s19  ;;  %s2711_s21 = smov [#allocation2]  }
  0x12   : > { %s349_s22 = sshll.u32 %s2711_s21, 4  ;;  %p2299_p11 = pneg %p2842_p10  ;;  %s350_s22 = int_to_ptr.vmem [resolvable:$true] %s349_s22 }
  0x13   : > { %s2712_s24 = smov [#allocation5]   ;;  %s2600_s15 = scalar_lea.vmem %s350_s22, 8192 }
  0x14   : > { %p2850_p12 = pnand %p3085_p9, %p2299_p11  ;;  %s389_s30 = sshll.u32 %s2712_s24, 4  ;;  %s390_s30 = int_to_ptr.vmem [resolvable:$true] %s389_s30 }
  0x15   : > { %p2601_p0 = scmp.ne.s32.totalorder %s350_s22, %s2600_s15  ;;  %p2608_p3 = scmp.lt.s32.totalorder %s350_s22, %s350_s22 }
  0x16   : > { %p2591_p13 = pneg %p2850_p12  ;;  %p2609_p4 = scmp.lt.s32.totalorder %s2600_s15, %s2600_s15 }
  0x18   : > { %p2603_p1 = pnand %p2601_p0, %p2591_p13  ;;  %p2610_p7 = por %p2609_p4, %p2608_p3 }
  0x1a   : > { %p2604_p2 = pneg %p2603_p1 }
  0x1c   : > { %p2611_p8 = pnand %p2610_p7, %p2604_p2 }
  0x1e   : > { %2614 = shalt.err (!%p2611_p8)
}
  0x1f   : > { %s2713_s16 = smov 128   ;;  %s2714_s21 = smov 8  }
  0x20   : > { %2302 = dma.hbm_to_vmem [thread:$0]  (!%p2850_p12), %s3071_s1, 8192, %s350_s22, [#allocation3], %s2713_s16, %s2713_s16, %s2714_s21  }
  0x21   : > { %s2626_s27 = scalar_lea.vmem %s390_s30, 8192  ;;  %p2634_p9 = scmp.lt.s32.totalorder %s390_s30, %s390_s30 }
  0x22   : > { %p2627_p11 = scmp.ne.s32.totalorder %s390_s30, %s2626_s27  ;;  %p2635_p6 = scmp.lt.s32.totalorder %s2626_s27, %s2626_s27 }
  0x24   : > { %p2629_p0 = pnand %p2627_p11, %p2591_p13  ;;  %p2636_p3 = por %p2635_p6, %p2634_p9 }
  0x26   : > { %p2630_p1 = pneg %p2629_p0 }
  0x28   : > { %p2637_p2 = pnand %p2636_p3, %p2630_p1 }
  0x2a   : > { %2640 = shalt.err (!%p2637_p2)
}
  0x2b   : > { %s2715_s15 = smov 256   ;;  %s2716_s14 = smov 16  }
  0x2c   : > { %2305 = dma.hbm_to_vmem [thread:$0]  (!%p2850_p12), %s3081_s11, 8192, %s390_s30, [#allocation6], %s2715_s15, %s2715_s15, %s2716_s14  }
  0x2d   : > { %418 = sbr.rel (%p2842_p10) target bundleno = 1361 (0x551), region = 72  ;;  %p3099_p4 = scmp.eq.s32.totalorder (!%p2842_p10), %s2814_s29, 0 }
  0x32   : > { %2684 = dma.done.wait (%p3099_p4), [#allocation3], 8192   ;;  %p3100_p13 = pmov %p3099_p4 }
  0x33   : > { %p3101_p6 = pmov %p3099_p4 }
  0x34   : > { %2686 = vsyncadd (%p3100_p13), [#allocation3], 4294959104 }
  0x35   : > { %2688 = dma.done.wait (%p3101_p6), [#allocation6], 8192   ;;  %p3102_p9 = pmov %p3099_p4 }
  0x36   : > { %v2358_v0 = vld [vmem:[#allocation2 + $0x74] ss:$8 sps:$4 sm:$0xff]   ;;  %v2362_v2 = vld [vmem:[#allocation2 + $0x70] ss:$8 sps:$4 sm:$0xff]   ;;  %v2364_v4 = vld [vmem:[#allocation2 + $0x64] ss:$8 sps:$4 sm:$0xff]  }
  0x37   : > { %2690 = vsyncadd (%p3102_p9), [#allocation6], 4294959104  ;;  %v2360_v1 = vld [vmem:[#allocation2 + $0x174] ss:$8 sps:$4 sm:$0xff]   ;;  %896 = vmatprep.subr.bf16.mxu0 %v2358_v0  ;;  %v2363_v3 = vld [vmem:[#allocation2 + $0x170] ss:$8 sps:$4 sm:$0xff]  }
  0x38   : > { %939 = vmatprep.subr.bf16.mxu1 %v2360_v1  ;;  %897 = vmatpush1.bf16.msra.mxu0 %v2362_v2  ;;  %v2366_v5 = vld [vmem:[#allocation2 + $0x164] ss:$8 sps:$4 sm:$0xff]   ;;  %v2368_v6 = vld [vmem:[#allocation2 + $0x60] ss:$8 sps:$4 sm:$0xff]   ;;  %v2370_v8 = vld [vmem:[#allocation2 + $0x54] ss:$8 sps:$4 sm:$0xff]  }
  0x39   : > { %940 = vmatpush1.bf16.msra.mxu1 %v2363_v3  ;;  %898 = vmatprep.subr.bf16.mxu0 %v2364_v4  ;;  %v2369_v7 = vld [vmem:[#allocation2 + $0x160] ss:$8 sps:$4 sm:$0xff]   ;;  %v2372_v9 = vld [vmem:[#allocation2 + $0x154] ss:$8 sps:$4 sm:$0xff]   ;;  %v2374_v10 = vld [vmem:[#allocation2 + $0x50] ss:$8 sps:$4 sm:$0xff]  }
  0x3a   : > { %941 = vmatprep.subr.bf16.mxu1 %v2366_v5  ;;  %v2375_v11 = vld [vmem:[#allocation2 + $0x150] ss:$8 sps:$4 sm:$0xff]   ;;  %v2376_v12 = vld [vmem:[#allocation2 + $0x44] ss:$8 sps:$4 sm:$0xff]   ;;  %v2380_v14 = vld [vmem:[#allocation2 + $0x40] ss:$8 sps:$4 sm:$0xff]  }
  0x3b   : > { %v2378_v13 = vld [vmem:[#allocation2 + $0x144] ss:$8 sps:$4 sm:$0xff]   ;;  %v2381_v15 = vld [vmem:[#allocation2 + $0x140] ss:$8 sps:$4 sm:$0xff]   ;;  %v2382_v16 = vld [vmem:[#allocation2 + $0x34] ss:$8 sps:$4 sm:$0xff]  }
  0x3c   : > { %899 = vmatpush1.bf16.msra.mxu0 %v2368_v6  ;;  %v2384_v17 = vld [vmem:[#allocation2 + $0x134] ss:$8 sps:$4 sm:$0xff]   ;;  %v2386_v18 = vld [vmem:[#allocation2 + $0x30] ss:$8 sps:$4 sm:$0xff]   ;;  %v2388_v20 = vld [vmem:[#allocation2 + $0x24] ss:$8 sps:$4 sm:$0xff]  }
  0x3d   : > { %942 = vmatpush1.bf16.msra.mxu1 %v2369_v7  ;;  %900 = vmatprep.subr.bf16.mxu0 %v2370_v8  ;;  %v2387_v19 = vld [vmem:[#allocation2 + $0x130] ss:$8 sps:$4 sm:$0xff]   ;;  %v2390_v21 = vld [vmem:[#allocation2 + $0x124] ss:$8 sps:$4 sm:$0xff]   ;;  %v2392_v22 = vld [vmem:[#allocation2 + $0x20] ss:$8 sps:$4 sm:$0xff]  }
  0x3e   : > { %943 = vmatprep.subr.bf16.mxu1 %v2372_v9  ;;  %v2393_v23 = vld [vmem:[#allocation2 + $0x120] ss:$8 sps:$4 sm:$0xff]   ;;  %v2394_v24 = vld [vmem:[#allocation2 + $0x14] ss:$8 sps:$4 sm:$0xff]   ;;  %v2398_v26 = vld [vmem:[#allocation2 + $0x10] ss:$8 sps:$4 sm:$0xff]  }
  0x3f   : > { %v2396_v25 = vld [vmem:[#allocation2 + $0x114] ss:$8 sps:$4 sm:$0xff]   ;;  %v2399_v27 = vld [vmem:[#allocation2 + $0x110] ss:$8 sps:$4 sm:$0xff]   ;;  %v2400_v28 = vld [vmem:[#allocation2 + $0x4] ss:$8 sps:$4 sm:$0xff]  }
  0x40   : > { %901 = vmatpush1.bf16.msra.mxu0 %v2374_v10  ;;  %v2402_v29 = vld [vmem:[#allocation2 + $0x104] ss:$8 sps:$4 sm:$0xff]   ;;  %s2055_s25 = sshll.u32 %s2814_s29, 1  ;;  %v2404_v30 = vld [vmem:[#allocation2] ss:$8 sps:$4 sm:$0xff]   ;;  %v2460_v2 = vld [vmem:[%s3073_s3 + $0x78] sm:$0xff]  }
  0x41   : > { %944 = vmatpush1.bf16.msra.mxu1 %v2375_v11  ;;  %902 = vmatprep.subr.bf16.mxu0 %v2376_v12  ;;  %v2405_v31 = vld [vmem:[#allocation2 + $0x100] ss:$8 sps:$4 sm:$0xff]   ;;  %v2406_v32 = vld [vmem:[#allocation2 + $0xf4] ss:$8 sps:$4 sm:$0xff]   ;;  %p468_p10 = scmp.lt.s32.totalorder %s2055_s25, 3  ;;  %vm2718_vm0 = vmmov 0  }
  0x42   : > { %945 = vmatprep.subr.bf16.mxu1 %v2378_v13  ;;  %v2408_v33 = vld [vmem:[#allocation2 + $0x1f4] ss:$8 sps:$4 sm:$0xff]   ;;  %v2410_v34 = vld [vmem:[#allocation2 + $0xf0] ss:$8 sps:$4 sm:$0xff]   ;;  %v2412_v36 = vld [vmem:[#allocation2 + $0xe4] ss:$8 sps:$4 sm:$0xff]  }
  0x43   : > { %v2411_v35 = vld [vmem:[#allocation2 + $0x1f0] ss:$8 sps:$4 sm:$0xff]   ;;  %v2414_v37 = vld [vmem:[#allocation2 + $0x1e4] ss:$8 sps:$4 sm:$0xff]   ;;  %s3112_s25 = smov (!%p468_p10, %s2055_s25), 3  ;;  %vm1206_vm1 = vcmask 523264  }
  0x44   : > { %903 = vmatpush1.bf16.msra.mxu0 %v2380_v14  ;;  %v2416_v38 = vld [vmem:[#allocation2 + $0xe0] ss:$8 sps:$4 sm:$0xff]   ;;  %v2418_v40 = vld [vmem:[#allocation2 + $0xd4] ss:$8 sps:$4 sm:$0xff]   ;;  %s2235_s27 = sshll.u32 %s3112_s25, 4  ;;  %vm1267_vm2 = vcmask 130048  }
  0x45   : > { %946 = vmatpush1.bf16.msra.mxu1 %v2381_v15  ;;  %904 = vmatprep.subr.bf16.mxu0 %v2382_v16  ;;  %v2417_v39 = vld [vmem:[#allocation2 + $0x1e0] ss:$8 sps:$4 sm:$0xff]   ;;  %v2420_v41 = vld [vmem:[#allocation2 + $0x1d4] ss:$8 sps:$4 sm:$0xff]   ;;  %v2422_v42 = vld [vmem:[#allocation2 + $0xd0] ss:$8 sps:$4 sm:$0xff]   ;;  %s2886_s19 = scalar_lea.vmem %s3070_s0, %s2235_s27 }
  0x46   : > { %947 = vmatprep.subr.bf16.mxu1 %v2384_v17  ;;  %v2423_v43 = vld [vmem:[#allocation2 + $0x1d0] ss:$8 sps:$4 sm:$0xff]   ;;  %v2424_v44 = vld [vmem:[#allocation2 + $0xc4] ss:$8 sps:$4 sm:$0xff]   ;;  %v2428_v46 = vld [vmem:[#allocation2 + $0xc0] ss:$8 sps:$4 sm:$0xff]  }
  0x47   : > { %v2426_v45 = vld [vmem:[#allocation2 + $0x1c4] ss:$8 sps:$4 sm:$0xff]   ;;  %v2429_v47 = vld [vmem:[#allocation2 + $0x1c0] ss:$8 sps:$4 sm:$0xff]   ;;  %v2430_v48 = vld [vmem:[#allocation2 + $0xb4] ss:$8 sps:$4 sm:$0xff]  }
  0x48   : > { %905 = vmatpush1.bf16.msra.mxu0 %v2386_v18  ;;  %v2456_v49 = vld [vmem:[%s2886_s19 + $0x4] ss:$16 sps:$4 sm:$0xff]   ;;  %v2459_v51 = vld [vmem:[%s2886_s19 + $0xc] ss:$16 sps:$4 sm:$0xff]   ;;  %v2434_v52 = vld [vmem:[#allocation2 + $0xb0] ss:$8 sps:$4 sm:$0xff]  }
  0x49   : > { %948 = vmatpush1.bf16.msra.mxu1 %v2387_v19  ;;  %906 = vmatprep.subr.bf16.mxu0 %v2388_v20  ;;  %v2432_v50 = vld [vmem:[#allocation2 + $0x1b4] ss:$8 sps:$4 sm:$0xff]   ;;  %v2435_v53 = vld [vmem:[#allocation2 + $0x1b0] ss:$8 sps:$4 sm:$0xff]   ;;  %v2436_v54 = vld [vmem:[#allocation2 + $0xa4] ss:$8 sps:$4 sm:$0xff]  }
  0x4a   : > { %949 = vmatprep.subr.bf16.mxu1 %v2390_v21  ;;  %928 = vmatprep.mubr.bf16.mxu0 %v2456_v49  ;;  %v2438_v55 = vld [vmem:[#allocation2 + $0x1a4] ss:$8 sps:$4 sm:$0xff]   ;;  %v2440_v56 = vld [vmem:[#allocation2 + $0xa0] ss:$8 sps:$4 sm:$0xff]   ;;  %v2442_v58 = vld [vmem:[#allocation2 + $0x94] ss:$8 sps:$4 sm:$0xff]   ;;  %v546_v21 = vlaneseq }
  0x4b   : > { %971 = vmatprep.mubr.bf16.mxu1 %v2459_v51  ;;  %v2441_v57 = vld [vmem:[#allocation2 + $0x1a0] ss:$8 sps:$4 sm:$0xff]   ;;  %v2444_v59 = vld [vmem:[#allocation2 + $0x194] ss:$8 sps:$4 sm:$0xff]   ;;  %v2446_v60 = vld [vmem:[#allocation2 + $0x90] ss:$8 sps:$4 sm:$0xff]  }
  0x4c   : > { %907 = vmatpush1.bf16.msra.mxu0 %v2392_v22  ;;  %v2447_v61 = vld [vmem:[#allocation2 + $0x190] ss:$8 sps:$4 sm:$0xff]   ;;  %v2448_v62 = vld [vmem:[#allocation2 + $0x84] ss:$8 sps:$4 sm:$0xff]   ;;  %v2452_v0 = vld [vmem:[#allocation2 + $0x80] ss:$8 sps:$4 sm:$0xff]  }
  0x4d   : > { %950 = vmatpush1.bf16.msra.mxu1 %v2393_v23  ;;  %908 = vmatprep.subr.bf16.mxu0 %v2394_v24  ;;  %v2450_v63 = vld [vmem:[#allocation2 + $0x184] ss:$8 sps:$4 sm:$0xff]   ;;  %v2453_v1 = vld [vmem:[#allocation2 + $0x180] ss:$8 sps:$4 sm:$0xff]   ;;  %v2461_v5 = vld [vmem:[%s3073_s3 + $0x38] sm:$0xff]   ;;  %v2717_v20 = vmov 0.0  }
  0x4e   : > { %951 = vmatprep.subr.bf16.mxu1 %v2396_v25  ;;  %v2454_v3 = vld [vmem:[%s2886_s19] ss:$16 sps:$4 sm:$0xff]   ;;  %v2457_v4 = vld [vmem:[%s2886_s19 + $0x8] ss:$16 sps:$4 sm:$0xff]   ;;  %v2940_v22 = vshrl.u32 %v546_v21, 7  ;;  %s464_s21 = sand.u32 1, %s2701_s26  }
  0x4f   : > { %v2462_v6 = vld [vmem:[%s3073_s3 + $0x70] sm:$0xff]   ;;  %v2464_v8 = vld [vmem:[%s3073_s3 + $0x68] sm:$0xff]   ;;  %v2466_v10 = vld [vmem:[%s3073_s3 + $0x60] sm:$0xff]   ;;  %s2054_s24 = sshll.u32 %s464_s21, 5  ;;  %s2241_s27 = sshll.u32 %s2814_s29, 9 }
  0x50   : > { %909 = vmatpush1.bf16.msra.mxu0 %v2398_v26  ;;  %v2463_v7 = vld [vmem:[%s3073_s3 + $0x30] sm:$0xff]   ;;  %v2465_v9 = vld [vmem:[%s3073_s3 + $0x28] sm:$0xff]   ;;  %v2467_v11 = vld [vmem:[%s3073_s3 + $0x20] sm:$0xff]   ;;  %v2943_v23 = vsub.s32 1, %v2940_v22  ;;  %v2946_v24 = vsub.s32 0, %v2940_v22  ;;  %s466_s15 = scalar_lea.vmem [#allocation7], %s2054_s24  ;;  %s3026_s19 = scalar_lea.hbm %s3083_s13, %s2241_s27 }
  0x51   : > { %952 = vmatpush1.bf16.msra.mxu1 %v2399_v27  ;;  %910 = vmatprep.subr.bf16.mxu0 %v2400_v28  ;;  %v2468_v12 = vld [vmem:[%s3073_s3 + $0x58] sm:$0xff]   ;;  %v2470_v14 = vld [vmem:[%s3073_s3 + $0x50] sm:$0xff]   ;;  %v2472_v16 = vld [vmem:[%s3073_s3 + $0x48] sm:$0xff]   ;;  %s1962_s25 = sshll.u32 %s466_s15, 4  ;;  %s3030_s29 = scalar_lea.sflag [#allocation4], %s464_s21  ;;  %s3021_s25 = int_to_ptr.vmem [resolvable:$true] %s1962_s25 }
  0x52   : > { %953 = vmatprep.subr.bf16.mxu1 %v2402_v29  ;;  %v2469_v13 = vld [vmem:[%s3073_s3 + $0x18] sm:$0xff]   ;;  %v2471_v15 = vld [vmem:[%s3073_s3 + $0x10] sm:$0xff]   ;;  %v2473_v17 = vld [vmem:[%s3073_s3 + $0x8] sm:$0xff]   ;;  %s2641_s20 = scalar_lea.vmem %s3021_s25, 512  ;;  %s2720_s22 = smov [#allocation7]  }
  0x53   : > { %v2474_v18 = vld [vmem:[%s3073_s3 + $0x40] sm:$0xff]   ;;  %v2477_v51 = vld [vmem:[%s3075_s5 + $0x10] sm:$0xff]   ;;  %p2642_p12 = scmp.ne.s32.totalorder %s3021_s25, %s2641_s20  ;;  %s2645_s23 = sshll.u32 %s2720_s22, 4  ;;  %s2646_s23 = int_to_ptr.vmem [resolvable:$false] %s2645_s23 }
  0x54   : > { %911 = vmatpush1.bf16.msra.mxu0 %v2404_v30  ;;  %v2475_v19 = vld [vmem:[%s3073_s3] sm:$0xff]   ;;  %s2647_s30 = scalar_lea.vmem %s2646_s23, 1024  ;;  %p2648_p11 = scmp.lt.s32.totalorder %s3021_s25, %s2646_s23 }
  0x55   : > { %954 = vmatpush1.bf16.msra.mxu1 %v2405_v31  ;;  %912 = vmatprep.subr.bf16.mxu0 %v2406_v32  ;;  %v544_v25 = vld [vmem:[%s3072_s2] sm:$0x3]  ;;  %v2495_v21 = vld [vmem:[#allocation5 + $0xe4] ss:$16 sps:$4 sm:$0xff]   ;;  %p2643_p7 = pnand %p2642_p12, %p2831_p5  ;;  %p2649_p0 = scmp.lt.s32.totalorder %s2647_s30, %s2641_s20 }
  0x56   : > { %955 = vmatprep.subr.bf16.mxu1 %v2408_v33  ;;  %v553_v26 = vrot.slane %v544_v25, %v2943_v23  ;;  %v549_v27 = vrot.slane %v544_v25, %v2946_v24  ;;  %v2498_v25 = vld [vmem:[#allocation5 + $0xec] ss:$16 sps:$4 sm:$0xff]  }
  0x57   : > { %p2644_p8 = pneg %p2643_p7  ;;  %p2650_p1 = por %p2649_p0, %p2648_p11 }
  0x58   : > { %913 = vmatpush2.bf16.msra.mxu0 %v2410_v34 }
  0x59   : > { %956 = vmatpush2.bf16.msra.mxu1 %v2411_v35  ;;  %914 = vmatprep.subr.bf16.mxu0 %v2412_v36  ;;  %p2651_p3 = pnand %p2650_p1, %p2644_p8 }
  0x5a   : > { %957 = vmatprep.subr.bf16.mxu1 %v2414_v37 }
  0x5c   : > { %915 = vmatpush2.bf16.msra.mxu0 %v2416_v38 }
  0x5d   : > { %958 = vmatpush2.bf16.msra.mxu1 %v2417_v39  ;;  %916 = vmatprep.subr.bf16.mxu0 %v2418_v40 }
  0x5e   : > { %959 = vmatprep.subr.bf16.mxu1 %v2420_v41 }
  0x60   : > { %917 = vmatpush2.bf16.msra.mxu0 %v2422_v42 }
  0x61   : > { %960 = vmatpush2.bf16.msra.mxu1 %v2423_v43  ;;  %918 = vmatprep.subr.bf16.mxu0 %v2424_v44 }
  0x62   : > { %961 = vmatprep.subr.bf16.mxu1 %v2426_v45 }
  0x64   : > { %919 = vmatpush2.bf16.msra.mxu0 %v2428_v46 }
  0x65   : > { %962 = vmatpush2.bf16.msra.mxu1 %v2429_v47  ;;  %920 = vmatprep.subr.bf16.mxu0 %v2430_v48 }
  0x66   : > { %963 = vmatprep.subr.bf16.mxu1 %v2432_v50  ;;  %v2476_v50 = vld [vmem:[%s3075_s5 + $0x18] sm:$0xff]  }
  0x68   : > { %921 = vmatpush2.bf16.msra.mxu0 %v2434_v52  ;;  %v2478_v52 = vld [vmem:[%s3075_s5 + $0x8] sm:$0xff]  }
  0x69   : > { %964 = vmatpush2.bf16.msra.mxu1 %v2435_v53  ;;  %922 = vmatprep.subr.bf16.mxu0 %v2436_v54  ;;  %v2479_v53 = vld [vmem:[%s3075_s5] sm:$0xff]  }
  0x6a   : > { %965 = vmatprep.subr.bf16.mxu1 %v2438_v55 }
  0x6c   : > { %923 = vmatpush2.bf16.msra.mxu0 %v2440_v56 }
  0x6d   : > { %966 = vmatpush2.bf16.msra.mxu1 %v2441_v57  ;;  %924 = vmatprep.subr.bf16.mxu0 %v2442_v58  ;;  %v2126_v57 = vld [vmem:[%s3074_s4] ss:$0 sm:$0xff] }
  0x6e   : > { %967 = vmatprep.subr.bf16.mxu1 %v2444_v59 }
  0x70   : > { %925 = vmatpush2.bf16.msra.mxu0 %v2446_v60 }
  0x71   : > { %968 = vmatpush2.bf16.msra.mxu1 %v2447_v61  ;;  %926 = vmatprep.subr.bf16.mxu0 %v2448_v62 }
  0x72   : > { %969 = vmatprep.subr.bf16.mxu1 %v2450_v63 }
  0x74   : > { %927 = vmatpush2.bf16.msra.mxu0 %v2452_v0 }
  0x75   : > { %970 = vmatpush2.bf16.msra.mxu1 %v2453_v1  ;;  %2242 = vmatprep.subr.bf16.mxu0 %v2460_v2  ;;  %v2480_v2 = vld [vmem:[%s3077_s7] sm:$0xff]  }
  0x76   : > { %2271 = vmatprep.subr.bf16.mxu1 %v2717_v20 }
  0x77   : > { %929 = vmatmul.mubr.bf16.vlgmr.msra.gmra.mxu0 %v2454_v3  ;;  %v2483_v3 = vld [vmem:[%s3079_s9 + $0x34] ss:$8 sps:$4 sm:$0xff]  }
  0x78   : > { %972 = vmatmul.mubr.bf16.vlgmr.msra.gmra.mxu1 %v2457_v4  ;;  %2243 = vmatpush3.bf16.msra.mxu0 %v2461_v5  ;;  %v2143_v5 = vld [vmem:[%s3076_s6] ss:$0 sm:$0xff] }
  0x79   : > { %2244 = vmatprep.subr.bf16.mxu0 %v2462_v6  ;;  %2272 = vmatpush3.bf16.msra.mxu1 %v2476_v50  ;;  %v2149_v50 = vld [vmem:[%s3078_s8] ss:$0 sm:$0xff] }
  0x7a   : > { %2273 = vmatprep.subr.bf16.mxu1 %v2717_v20  ;;  %2279 = vmatprep.mubr.msk.bf16.mxu1 %vm2718_vm0, %v2717_v20 }
  0x7c   : > { %2245 = vmatpush3.bf16.msra.mxu0 %v2463_v7 }
  0x7d   : > { %2246 = vmatprep.subr.bf16.mxu0 %v2464_v8  ;;  %2274 = vmatpush3.bf16.msra.mxu1 %v2477_v51 }
  0x7e   : > { %2275 = vmatprep.subr.bf16.mxu1 %v2717_v20 }
  0x80   : > { %2247 = vmatpush3.bf16.msra.mxu0 %v2465_v9 }
  0x81   : > { %2248 = vmatprep.subr.bf16.mxu0 %v2466_v10  ;;  %2276 = vmatpush3.bf16.msra.mxu1 %v2478_v52 }
  0x82   : > { %2277 = vmatprep.subr.bf16.mxu1 %v2717_v20 }
  0x84   : > { %2249 = vmatpush3.bf16.msra.mxu0 %v2467_v11  ;;  %v2481_v11 = vld [vmem:[%s3079_s9 + $0x30] ss:$8 sps:$4 sm:$0xff]  }
  0x85   : > { %2250 = vmatprep.subr.bf16.mxu0 %v2468_v12  ;;  %2278 = vmatpush3.bf16.msra.mxu1 %v2479_v53 }
  0x86   : > { %2283 = vmatprep.subr.bf16.mxu1 %v2717_v20 }
  0x88   : > { %2251 = vmatpush3.bf16.msra.mxu0 %v2469_v13  ;;  %v2486_v13 = vld [vmem:[%s3079_s9 + $0x24] ss:$8 sps:$4 sm:$0xff]  }
  0x89   : > { %2252 = vmatprep.subr.bf16.mxu0 %v2470_v14  ;;  %v2484_v14 = vld [vmem:[%s3079_s9 + $0x20] ss:$8 sps:$4 sm:$0xff]  }
  0x8c   : > { %2253 = vmatpush3.bf16.msra.mxu0 %v2471_v15  ;;  %v2489_v15 = vld [vmem:[%s3079_s9 + $0x14] ss:$8 sps:$4 sm:$0xff]  }
  0x8d   : > { %2254 = vmatprep.subr.bf16.mxu0 %v2472_v16  ;;  %v2487_v16 = vld [vmem:[%s3079_s9 + $0x10] ss:$8 sps:$4 sm:$0xff]  }
  0x90   : > { %2255 = vmatpush3.bf16.msra.mxu0 %v2473_v17  ;;  %v2492_v17 = vld [vmem:[%s3079_s9 + $0x4] ss:$8 sps:$4 sm:$0xff]  }
  0x91   : > { %2256 = vmatprep.subr.bf16.mxu0 %v2474_v18  ;;  %v2490_v18 = vld [vmem:[%s3079_s9] ss:$8 sps:$4 sm:$0xff]  }
  0x94   : > { %2257 = vmatpush3.bf16.msra.mxu0 %v2475_v19  ;;  %v2719_v19 = vmov 0  }
  0x95   : > { %1833 = vmatprep.subr.bf16.mxu0 %v2495_v21  ;;  %v2573_v21 = vld [vmem:[#allocation5 + $0x144] ss:$16 sps:$4 sm:$0xff]  }
 0x137   : > { %v930_v28 = vpop.f32.mrf.mxu0 }
 0x138   : > { %v973_v29 = vpop.f32.mrf.mxu1  ;;  %v931_v33 = vadd.f32 %v930_v28, %v549_v27  ;;  %v2507_v28 = vld [vmem:[#allocation5 + $0xa4] ss:$16 sps:$4 sm:$0xff]  }
 0x139   : > { %v932_v30 = vpop.f32.mrf.mxu0 }
 0x13a   : > { %v975_v31 = vpop.f32.mrf.mxu1  ;;  %v933_v32 = vadd.f32 %v932_v30, %v553_v26  ;;  %v974_v41 = vadd.f32 %v973_v29, %v931_v33  ;;  %v2505_v29 = vld [vmem:[#allocation5 + $0xa0] ss:$16 sps:$4 sm:$0xff]   ;;  %v2513_v30 = vld [vmem:[#allocation5 + $0x84] ss:$16 sps:$4 sm:$0xff]  }
 0x13b   : > { %v934_v34 = vpop.f32.mrf.mxu0  ;;  %v2517_v33 = vld [vmem:[#allocation5 + $0x60] ss:$16 sps:$4 sm:$0xff]  }
 0x13c   : > { %v977_v35 = vpop.f32.mrf.mxu1  ;;  %v935_v36 = vadd.f32 %v934_v34, %v549_v27  ;;  %v976_v38 = vadd.f32 %v975_v31, %v933_v32  ;;  %v982_v47 = vmax.f32 %v974_v41, 0.0  ;;  %v2499_v27 = vld [vmem:[#allocation5 + $0xc0] ss:$16 sps:$4 sm:$0xff]   ;;  %v2519_v32 = vld [vmem:[#allocation5 + $0x64] ss:$16 sps:$4 sm:$0xff]  }
 0x13d   : > { %v936_v37 = vpop.f32.mrf.mxu0  ;;  %v2511_v31 = vld [vmem:[#allocation5 + $0x80] ss:$16 sps:$4 sm:$0xff]   ;;  %v2525_v34 = vld [vmem:[#allocation5 + $0x44] ss:$16 sps:$4 sm:$0xff]  }
 0x13e   : > { %v978_v39 = vadd.f32 %v977_v35, %v935_v36  ;;  %v937_v40 = vadd.f32 %v936_v37, %v553_v26  ;;  %v979_v42 = vpop.f32.mrf.mxu1  ;;  %v983_v45 = vmax.f32 %v976_v38, 0.0  ;;  %v2501_v26 = vld [vmem:[#allocation5 + $0xc4] ss:$16 sps:$4 sm:$0xff]   ;;  %v2523_v35 = vld [vmem:[#allocation5 + $0x40] ss:$16 sps:$4 sm:$0xff]  }
 0x13f   : > { %v2531_v36 = vld [vmem:[#allocation5 + $0x24] ss:$16 sps:$4 sm:$0xff]   ;;  %v2529_v37 = vld [vmem:[#allocation5 + $0x20] ss:$16 sps:$4 sm:$0xff]  }
 0x140   : > { %v980_v43 = vadd.f32 %v979_v42, %v937_v40  ;;  %v984_v44 = vmax.f32 %v978_v39, 0.0  ;;  %v2537_v38 = vld [vmem:[#allocation5 + $0x4] ss:$16 sps:$4 sm:$0xff]   ;;  %v2535_v39 = vld [vmem:[#allocation5] ss:$16 sps:$4 sm:$0xff]  }
 0x141   : > { %v2543_v40 = vld [vmem:[#allocation5 + $0x1e4] ss:$16 sps:$4 sm:$0xff]   ;;  %v2541_v41 = vld [vmem:[#allocation5 + $0x1e0] ss:$16 sps:$4 sm:$0xff]  }
 0x142   : > { %v985_v46 = vmax.f32 %v980_v43, 0.0  ;;  %v986_v49 = vpack.c.bf16 %v984_v44, %v982_v47  ;;  %v2549_v42 = vld [vmem:[#allocation5 + $0x1c4] ss:$16 sps:$4 sm:$0xff]   ;;  %v2547_v43 = vld [vmem:[#allocation5 + $0x1c0] ss:$16 sps:$4 sm:$0xff]  }
 0x143   : > { %v2555_v44 = vld [vmem:[#allocation5 + $0x1a4] ss:$16 sps:$4 sm:$0xff]   ;;  %v2559_v47 = vld [vmem:[#allocation5 + $0x180] ss:$16 sps:$4 sm:$0xff]  }
 0x144   : > { %v987_v48 = vpack.c.bf16 %v985_v46, %v983_v45  ;;  %v2553_v45 = vld [vmem:[#allocation5 + $0x1a0] ss:$16 sps:$4 sm:$0xff]   ;;  %v2561_v46 = vld [vmem:[#allocation5 + $0x184] ss:$16 sps:$4 sm:$0xff]  }
 0x146   : > { %1155 = vmatprep.mubr.bf16.mxu0 %v987_v48  ;;  %v2567_v48 = vld [vmem:[#allocation5 + $0x164] ss:$16 sps:$4 sm:$0xff]  }
 0x147   : > { %1156 = vmatmul.mubr.bf16.vlgmr.msra.gmra.mxu0 %v986_v49  ;;  %v2565_v49 = vld [vmem:[#allocation5 + $0x160] ss:$16 sps:$4 sm:$0xff]  }
 0x207   : > { %v2258_v54 = vpop.f32.mrf.mxu0 }
 0x209   : > { %v2259_v55 = vpop.f32.mrf.mxu0 }
 0x20a   : > { %v2260_v56 = vadd.f32 %v2259_v55, %v2258_v54 }
 0x20b   : > { %v2261_v58 = vpop.f32.mrf.mxu0 }
 0x20c   : > { %v1158_v60 = vadd.f32 %v2260_v56, %v2126_v57 }
 0x20d   : > { %v2262_v59 = vpop.f32.mrf.mxu0 }
 0x20e   : > { %v2263_v61 = vadd.f32 %v2262_v59, %v2261_v58  ;;  %v1164_v63 = vmax.f32 %v1158_v60, 0.0  ;;  %v2496_v59 = vld [vmem:[#allocation5 + $0xe8] ss:$16 sps:$4 sm:$0xff]  }
 0x210   : > { %v1161_v62 = vadd.f32 %v2263_v61, %v2126_v57  ;;  %v2504_v61 = vld [vmem:[#allocation5 + $0xcc] ss:$16 sps:$4 sm:$0xff]  }
 0x212   : > { %v1165_v0 = vmax.f32 %v1161_v62, 0.0  ;;  %v2502_v62 = vld [vmem:[#allocation5 + $0xc8] ss:$16 sps:$4 sm:$0xff]  }
 0x214   : > { %v1166_v1 = vpack.c.bf16 %v1165_v0, %v1164_v63  ;;  %v2510_v63 = vld [vmem:[#allocation5 + $0xac] ss:$16 sps:$4 sm:$0xff]   ;;  %v2508_v0 = vld [vmem:[#allocation5 + $0xa8] ss:$16 sps:$4 sm:$0xff]  }
 0x216   : > { %2280 = vmatmul.mubr.msk.bf16.vlgmr.msra.gmra.mxu1 %vm1206_vm1, %v1166_v1  ;;  %v2516_v1 = vld [vmem:[#allocation5 + $0x8c] ss:$16 sps:$4 sm:$0xff]  }
 0x217   : > { %2285 = vmatprep.mubr.msk.bf16.mxu1 %vm2718_vm0, %v2717_v20  ;;  %2284 = vmatpush3.bf16.msra.mxu1 %v2480_v2  ;;  %v2493_v20 = vld [vmem:[#allocation5 + $0xe0] ss:$16 sps:$4 sm:$0xff]   ;;  %v2514_v2 = vld [vmem:[#allocation5 + $0x88] ss:$16 sps:$4 sm:$0xff]  }
 0x218   : > { %1386 = vmatprep.subr.bf16.mxu1 %v2483_v3  ;;  %1834 = vmatpush1.bf16.msra.mxu0 %v2493_v20  ;;  %v2522_v3 = vld [vmem:[#allocation5 + $0x6c] ss:$16 sps:$4 sm:$0xff]   ;;  %v2568_v20 = vld [vmem:[#allocation5 + $0x168] ss:$16 sps:$4 sm:$0xff]  }
 0x219   : > { %1835 = vmatprep.subr.bf16.mxu0 %v2501_v26  ;;  %v2571_v26 = vld [vmem:[#allocation5 + $0x140] ss:$16 sps:$4 sm:$0xff]  }
 0x21c   : > { %1836 = vmatpush1.bf16.msra.mxu0 %v2499_v27  ;;  %v2574_v27 = vld [vmem:[#allocation5 + $0x148] ss:$16 sps:$4 sm:$0xff]  }
 0x21d   : > { %1837 = vmatprep.subr.bf16.mxu0 %v2507_v28  ;;  %v2579_v28 = vld [vmem:[#allocation5 + $0x124] ss:$16 sps:$4 sm:$0xff]  }
 0x220   : > { %1838 = vmatpush1.bf16.msra.mxu0 %v2505_v29  ;;  %v2582_v29 = vld [vmem:[#allocation5 + $0x12c] ss:$16 sps:$4 sm:$0xff]  }
 0x221   : > { %1839 = vmatprep.subr.bf16.mxu0 %v2513_v30  ;;  %v2577_v30 = vld [vmem:[#allocation5 + $0x120] ss:$16 sps:$4 sm:$0xff]  }
 0x224   : > { %1840 = vmatpush1.bf16.msra.mxu0 %v2511_v31  ;;  %v2580_v31 = vld [vmem:[#allocation5 + $0x128] ss:$16 sps:$4 sm:$0xff]  }
 0x225   : > { %1841 = vmatprep.subr.bf16.mxu0 %v2519_v32  ;;  %v2585_v32 = vld [vmem:[#allocation5 + $0x104] ss:$16 sps:$4 sm:$0xff]  }
 0x228   : > { %1842 = vmatpush1.bf16.msra.mxu0 %v2517_v33  ;;  %v2588_v33 = vld [vmem:[#allocation5 + $0x10c] ss:$16 sps:$4 sm:$0xff]  }
 0x229   : > { %1843 = vmatprep.subr.bf16.mxu0 %v2525_v34  ;;  %v2583_v34 = vld [vmem:[#allocation5 + $0x100] ss:$16 sps:$4 sm:$0xff]  }
 0x22c   : > { %1844 = vmatpush1.bf16.msra.mxu0 %v2523_v35  ;;  %v2586_v35 = vld [vmem:[#allocation5 + $0x108] ss:$16 sps:$4 sm:$0xff]  }
 0x22d   : > { %1845 = vmatprep.subr.bf16.mxu0 %v2531_v36  ;;  %v1323_v36 = vld [vmem:[%s3080_s10] sm:$0x3] }
 0x230   : > { %1846 = vmatpush1.bf16.msra.mxu0 %v2529_v37 }
 0x231   : > { %1847 = vmatprep.subr.bf16.mxu0 %v2537_v38  ;;  %v1332_v38 = vrot.slane %v1323_v36, %v2943_v23 }
 0x234   : > { %1848 = vmatpush1.bf16.msra.mxu0 %v2535_v39  ;;  %v1328_v39 = vrot.slane %v1323_v36, %v2946_v24 }
 0x235   : > { %1849 = vmatprep.subr.bf16.mxu0 %v2543_v40 }
 0x238   : > { %1850 = vmatpush2.bf16.msra.mxu0 %v2541_v41 }
 0x239   : > { %1851 = vmatprep.subr.bf16.mxu0 %v2549_v42 }
 0x23c   : > { %1852 = vmatpush2.bf16.msra.mxu0 %v2547_v43 }
 0x23d   : > { %1853 = vmatprep.subr.bf16.mxu0 %v2555_v44 }
 0x240   : > { %1854 = vmatpush2.bf16.msra.mxu0 %v2553_v45 }
 0x241   : > { %1855 = vmatprep.subr.bf16.mxu0 %v2561_v46 }
 0x244   : > { %1856 = vmatpush2.bf16.msra.mxu0 %v2559_v47 }
 0x245   : > { %1857 = vmatprep.subr.bf16.mxu0 %v2567_v48 }
 0x248   : > { %1858 = vmatpush2.bf16.msra.mxu0 %v2565_v49 }
 0x249   : > { %1859 = vmatprep.subr.bf16.mxu0 %v2573_v21 }
 0x24c   : > { %1860 = vmatpush2.bf16.msra.mxu0 %v2571_v26 }
 0x24d   : > { %1861 = vmatprep.subr.bf16.mxu0 %v2579_v28 }
 0x250   : > { %1862 = vmatpush2.bf16.msra.mxu0 %v2577_v30 }
 0x251   : > { %1863 = vmatprep.subr.bf16.mxu0 %v2585_v32 }
 0x254   : > { %1864 = vmatpush2.bf16.msra.mxu0 %v2583_v34 }
 0x2d6   : > { %v1244_v4 = vpop.f32.mrf.mxu1 }
 0x2d7   : > { %v1245_v8 = vadd.f32 %v2143_v5, %v1244_v4  ;;  %v2520_v4 = vld [vmem:[#allocation5 + $0x68] ss:$16 sps:$4 sm:$0xff]  }
 0x2d8   : > { %v2281_v6 = vpop.f32.mrf.mxu1 }
 0x2d9   : > { %v2526_v6 = vld [vmem:[#allocation5 + $0x48] ss:$16 sps:$4 sm:$0xff]  }
 0x2da   : > { %v1247_v7 = vpop.f32.mrf.mxu1 }
 0x2db   : > { %v1248_v9 = vadd.f32 %v2143_v5, %v1247_v7  ;;  %v2528_v5 = vld [vmem:[#allocation5 + $0x4c] ss:$16 sps:$4 sm:$0xff]  }
 0x2dc   : > { %v2282_v10 = vpop.f32.mrf.mxu1  ;;  %v2534_v7 = vld [vmem:[#allocation5 + $0x2c] ss:$16 sps:$4 sm:$0xff]  }
 0x2dd   : > { %v1251_v12 = vpack.c.bf16 %v1248_v9, %v1245_v8  ;;  %v2532_v8 = vld [vmem:[#allocation5 + $0x28] ss:$16 sps:$4 sm:$0xff]   ;;  %v2540_v9 = vld [vmem:[#allocation5 + $0xc] ss:$16 sps:$4 sm:$0xff]  }
 0x2de   : > { %v2538_v10 = vld [vmem:[#allocation5 + $0x8] ss:$16 sps:$4 sm:$0xff]  }
 0x2df   : > { %2286 = vmatmul.mubr.msk.bf16.vlgmr.msra.gmra.mxu1 %vm1267_vm2, %v1251_v12  ;;  %v2544_v12 = vld [vmem:[#allocation5 + $0x1e8] ss:$16 sps:$4 sm:$0xff]  }
 0x2e0   : > { %1387 = vmatpush1.bf16.msra.mxu1 %v2481_v11  ;;  %1410 = vmatprep.mubr.bf16.mxu1 %v2719_v19  ;;  %v2546_v11 = vld [vmem:[#allocation5 + $0x1ec] ss:$16 sps:$4 sm:$0xff]  }
 0x2e1   : > { %1388 = vmatprep.subr.bf16.mxu1 %v2486_v13  ;;  %v2552_v13 = vld [vmem:[#allocation5 + $0x1cc] ss:$16 sps:$4 sm:$0xff]  }
 0x2e2   : > { %v2570_v19 = vld [vmem:[#allocation5 + $0x16c] ss:$16 sps:$4 sm:$0xff]  }
 0x2e4   : > { %1389 = vmatpush1.bf16.msra.mxu1 %v2484_v14  ;;  %v2550_v14 = vld [vmem:[#allocation5 + $0x1c8] ss:$16 sps:$4 sm:$0xff]  }
 0x2e5   : > { %1390 = vmatprep.subr.bf16.mxu1 %v2489_v15  ;;  %v2558_v15 = vld [vmem:[#allocation5 + $0x1ac] ss:$16 sps:$4 sm:$0xff]  }
 0x2e8   : > { %1391 = vmatpush1.bf16.msra.mxu1 %v2487_v16  ;;  %v2556_v16 = vld [vmem:[#allocation5 + $0x1a8] ss:$16 sps:$4 sm:$0xff]  }
 0x2e9   : > { %1392 = vmatprep.subr.bf16.mxu1 %v2492_v17  ;;  %v2564_v17 = vld [vmem:[#allocation5 + $0x18c] ss:$16 sps:$4 sm:$0xff]  }
 0x2ec   : > { %1393 = vmatpush1.bf16.msra.mxu1 %v2490_v18  ;;  %v2562_v18 = vld [vmem:[#allocation5 + $0x188] ss:$16 sps:$4 sm:$0xff]  }
 0x2ed   : > { %1876 = vmatprep.subr.bf16.mxu1 %v2498_v25  ;;  %v2576_v25 = vld [vmem:[#allocation5 + $0x14c] ss:$16 sps:$4 sm:$0xff]  }
 0x39f   : > { %v1305_v51 = vpop.f32.mrf.mxu1 }
 0x3a0   : > { %v1306_v53 = vadd.f32 %v2149_v50, %v1305_v51 }
 0x3a1   : > { %v2287_v52 = vpop.f32.mrf.mxu1 }
 0x3a2   : > { %v1312_v57 = vmax.f32 %v1306_v53, 0.0  ;;  %v1503_v53 = vsub.s32 2, %v2940_v22 }
 0x3a3   : > { %v1308_v54 = vpop.f32.mrf.mxu1 }
 0x3a4   : > { %v1309_v55 = vadd.f32 %v2149_v50, %v1308_v54  ;;  %v1507_v54 = vsub.s32 3, %v2940_v22 }
 0x3a5   : > { %v2288_v56 = vpop.f32.mrf.mxu1 }
 0x3a6   : > { %v1313_v58 = vmax.f32 %v1309_v55, 0.0  ;;  %v1491_v55 = vld [vmem:[%s3082_s12] sm:$0xf] }
 0x3a7   : > { %v1496_v56 = vrot.slane %v1491_v55, %v2946_v24 }
 0x3a8   : > { %v1314_v60 = vpack.c.bf16 %v1313_v58, %v1312_v57  ;;  %v1504_v57 = vrot.slane %v1491_v55, %v1503_v53  ;;  %v1500_v58 = vrot.slane %v1491_v55, %v2943_v23 }
 0x3aa   : > { %2160 = vmatmul.mubr.msk.bf16.vlgmr.msra.gmra.mxu1 %vm1206_vm1, %v1314_v60 }
 0x3ab   : > { %1877 = vmatpush1.bf16.msra.mxu1 %v2496_v59  ;;  %v1508_v59 = vrot.slane %v1491_v55, %v1507_v54 }
 0x3ac   : > { %1878 = vmatprep.subr.bf16.mxu1 %v2504_v61 }
 0x3af   : > { %1879 = vmatpush1.bf16.msra.mxu1 %v2502_v62 }
 0x3b0   : > { %1880 = vmatprep.subr.bf16.mxu1 %v2510_v63 }
 0x3b3   : > { %1881 = vmatpush1.bf16.msra.mxu1 %v2508_v0 }
 0x3b4   : > { %1882 = vmatprep.subr.bf16.mxu1 %v2516_v1 }
 0x3b7   : > { %1883 = vmatpush1.bf16.msra.mxu1 %v2514_v2 }
 0x3b8   : > { %1884 = vmatprep.subr.bf16.mxu1 %v2522_v3 }
 0x3bb   : > { %1885 = vmatpush1.bf16.msra.mxu1 %v2520_v4 }
 0x3bc   : > { %1886 = vmatprep.subr.bf16.mxu1 %v2528_v5 }
 0x3bf   : > { %1887 = vmatpush1.bf16.msra.mxu1 %v2526_v6 }
 0x3c0   : > { %1888 = vmatprep.subr.bf16.mxu1 %v2534_v7 }
 0x3c3   : > { %1889 = vmatpush1.bf16.msra.mxu1 %v2532_v8 }
 0x3c4   : > { %1890 = vmatprep.subr.bf16.mxu1 %v2540_v9 }
 0x3c7   : > { %1891 = vmatpush1.bf16.msra.mxu1 %v2538_v10 }
 0x3c8   : > { %1892 = vmatprep.subr.bf16.mxu1 %v2546_v11 }
 0x3cb   : > { %1893 = vmatpush2.bf16.msra.mxu1 %v2544_v12 }
 0x3cc   : > { %1894 = vmatprep.subr.bf16.mxu1 %v2552_v13 }
 0x3cf   : > { %1895 = vmatpush2.bf16.msra.mxu1 %v2550_v14 }
 0x3d0   : > { %1896 = vmatprep.subr.bf16.mxu1 %v2558_v15 }
 0x3d3   : > { %1897 = vmatpush2.bf16.msra.mxu1 %v2556_v16 }
 0x3d4   : > { %1898 = vmatprep.subr.bf16.mxu1 %v2564_v17 }
 0x3d7   : > { %1899 = vmatpush2.bf16.msra.mxu1 %v2562_v18 }
 0x3d8   : > { %1900 = vmatprep.subr.bf16.mxu1 %v2570_v19 }
 0x3db   : > { %1901 = vmatpush2.bf16.msra.mxu1 %v2568_v20 }
 0x3dc   : > { %1902 = vmatprep.subr.bf16.mxu1 %v2576_v25 }
 0x3df   : > { %1903 = vmatpush2.bf16.msra.mxu1 %v2574_v27 }
 0x3e0   : > { %1904 = vmatprep.subr.bf16.mxu1 %v2582_v29 }
 0x3e3   : > { %1905 = vmatpush2.bf16.msra.mxu1 %v2580_v31 }
 0x3e4   : > { %1906 = vmatprep.subr.bf16.mxu1 %v2588_v33 }
 0x3e7   : > { %1907 = vmatpush2.bf16.msra.mxu1 %v2586_v35 }
 0x46a   : > { %v1412_v37 = vpop.f32.mrf.mxu1 }
 0x46b   : > { %v1413_v44 = vadd.f32 %v1412_v37, %v1328_v39 }
 0x46c   : > { %v1414_v40 = vpop.f32.mrf.mxu1 }
 0x46d   : > { %v1415_v42 = vadd.f32 %v1414_v40, %v1332_v38  ;;  %v1421_v50 = vmax.f32 %v1413_v44, 0.0 }
 0x46e   : > { %v1416_v41 = vpop.f32.mrf.mxu1 }
 0x46f   : > { %v1417_v43 = vadd.f32 %v1416_v41, %v1328_v39  ;;  %v1422_v48 = vmax.f32 %v1415_v42, 0.0 }
 0x470   : > { %v1418_v45 = vpop.f32.mrf.mxu1 }
 0x471   : > { %v1419_v46 = vadd.f32 %v1418_v45, %v1332_v38  ;;  %v1423_v47 = vmax.f32 %v1417_v43, 0.0 }
 0x473   : > { %v1424_v49 = vmax.f32 %v1419_v46, 0.0  ;;  %v1425_v52 = vpack.c.bf16 %v1423_v47, %v1421_v50 }
 0x475   : > { %v1426_v51 = vpack.c.bf16 %v1424_v49, %v1422_v48 }
 0x477   : > { %1865 = vmatprep.mubr.bf16.mxu0 %v1426_v51  ;;  %1908 = vmatprep.mubr.bf16.mxu1 %v1426_v51 }
 0x478   : > { %1866 = vmatmul.mubr.bf16.vlgmr.msra.gmra.mxu0 %v1425_v52  ;;  %1909 = vmatmul.mubr.bf16.vlgmr.msra.gmra.mxu1 %v1425_v52 }
 0x538   : > { %v1867_v60 = vpop.f32.mrf.mxu0  ;;  %v1910_v61 = vpop.f32.mrf.mxu1 }
 0x539   : > { %v1868_v0 = vadd.f32 %v1867_v60, %v1496_v56  ;;  %v1911_v22 = vadd.f32 %v1910_v61, %v1504_v57 }
 0x53a   : > { %v1869_v62 = vpop.f32.mrf.mxu0  ;;  %v1912_v63 = vpop.f32.mrf.mxu1 }
 0x53b   : > { %v1870_v1 = vadd.f32 %v1869_v62, %v1500_v58  ;;  %v1913_v2 = vadd.f32 %v1912_v63, %v1508_v59 }
 0x53c   : > { %v1871_v3 = vpop.f32.mrf.mxu0  ;;  %v1914_v4 = vpop.f32.mrf.mxu1 }
 0x53d   : > { %v2236_v5 = vpack.c.bf16 %v1870_v1, %v1868_v0  ;;  %v2237_v24 = vpack.c.bf16 %v1913_v2, %v1911_v22  ;;  %v1872_v7 = vadd.f32 %v1871_v3, %v1496_v56  ;;  %v1915_v8 = vadd.f32 %v1914_v4, %v1504_v57 }
 0x53e   : > { %v1873_v23 = vpop.f32.mrf.mxu0  ;;  %v1916_v6 = vpop.f32.mrf.mxu1 }
 0x53f   : > { %1943 = vst [vmem:[%s466_s15] sm:$0xff] %v2236_v5  ;;  %1944 = vst [vmem:[%s466_s15 + $0x8] sm:$0xff] %v2237_v24  ;;  %v1874_v9 = vadd.f32 %v1873_v23, %v1500_v58  ;;  %v1917_v10 = vadd.f32 %v1916_v6, %v1508_v59 }
 0x541   : > { %v2238_v11 = vpack.c.bf16 %v1874_v9, %v1872_v7  ;;  %v2239_v12 = vpack.c.bf16 %v1917_v10, %v1915_v8 }
 0x543   : > { %1945 = vst [vmem:[%s466_s15 + $0x10] sm:$0xff] %v2238_v11  ;;  %1946 = vst [vmem:[%s466_s15 + $0x18] sm:$0xff] %v2239_v12 }
 0x544   : > { %2654 = shalt.err (!%p2651_p3)
}
 0x545   : > { %s2655_s16 = scalar_lea.hbm %s3026_s19, 512  ;;  %s2659_s15 = scalar_lea.hbm %s3083_s13, 1024 }
 0x546   : > { %p2656_p2 = scmp.ne.s32.totalorder %s3026_s19, %s2655_s16  ;;  %p2660_p6 = scmp.lt.s32.totalorder %s3026_s19, %s3083_s13 }
 0x547   : > { %p2661_p9 = scmp.lt.s32.totalorder %s2659_s15, %s2655_s16 }
 0x548   : > { %p2657_p4 = pnand %p2656_p2, %p2831_p5 }
 0x549   : > { %p2662_p10 = por %p2661_p9, %p2660_p6 }
 0x54a   : > { %p2658_p13 = pneg %p2657_p4 }
 0x54c   : > { %p2663_p12 = pnand %p2662_p10, %p2658_p13 }
 0x54e   : > { %2666 = shalt.err (!%p2663_p12)
}
 0x54f   : > { %s2721_s17 = smov 256   ;;  %s2722_s20 = smov 16  }
 0x550   : > { %2297 = dma.vmem_to_hbm [thread:$0]  (%p2831_p5), %s3021_s25, 512, %s3026_s19, %s3030_s29, %s2721_s17, %s2721_s17, %s2722_s20  }
 0x551 PF: > { %s3103_s22 = sld [smem:[#allocation11_spill]]  ;;  %p2314_p7 = scmp.ge.s32.totalorder %s2709_s28, 2 }
 0x552   : > { %s3104_s23 = sld [smem:[#allocation15_spill]] }
 0x557   : > { %s1977_s30 = sand.u32 1, %s3103_s22  }
 0x558   : > { %p3105_p8 = scmp.ne.s32.totalorder %s3104_s23, 0  ;;  %s1978_s16 = scalar_lea.sflag [#allocation4], %s1977_s30 }
 0x55a   : > { %p2307_p11 = pnand %p2314_p7, %p3105_p8 }
 0x55c   : > { %p2308_p0 = pneg %p2307_p11 }
 0x55e   : > { %2692 = dma.done.wait (%p2308_p0), %s1978_s16, 512  }
 0x55f   : > { %2694 = vsyncadd (%p2308_p0), %s1978_s16, 4294966784  ;;  %s3106_s28 = sld [smem:[#allocation13_spill]]  ;;  %s3109_s25 = smov %s2701_s26 }
 0x560   : > { %s3107_s21 = sld [smem:[#allocation12_spill]] }
 0x561   : > { %s3108_s27 = sld [smem:[#allocation14_spill]] }
 0x565   : > { %p25_p1 = scmp.ge.s32.totalorder %s3106_s28, 4  }
 0x566   : > { %s3110_s26 = smov %s3107_s21 }
 0x567   :  { %27 = sbr.rel (!%p25_p1) target bundleno = 5 (0x5), region = 116 }
 0x56c   :  { %1983 = vsyncpa [#allocation3], 1 }
 0x56d   :  { %1985 = vsyncpa [#allocation3 + $0x1], 1 }
 0x56e   :  { %1986 = vsyncpa [#allocation6], 1 }
 0x56f   :  { %1987 = vsyncpa [#allocation4], 1 }
 0x570   :  { %1989 = vsyncpa [#allocation4 + $0x1], 1 }

</bundles_post_ra>
